<compile_context>
chip_gen: v6e
topology: v6e:2x2x1
jax: 0.10.0
libtpu: 0.0.40
codegen_flags: <defaults>
</compile_context>

<pallas_src>
import functools

import numpy as np
import jax
import jax.numpy as jnp
from jax import lax
from jax.experimental import pallas as pl
from jax.experimental.pallas import tpu as pltpu

_LANE = 128
_MAX_TILE_R = 2048                      # (2048,128) f32 = 1 MiB / stream / buffer
_VMEM_LIMIT_BYTES = 32 * 1024 * 1024    # explicit budget (fits v5e..v7x)

# Numerical-Recipes Lanczos set (g = 5, 6 coefficients, |rel err| < 2e-10):
#   lgamma(x) = (x+0.5)*log(x+5.5) - (x+5.5) + log(sqrt(2*pi) * ser(x) / x)
#   ser(x)    = c0 + sum_{j=1..6} cof[j-1] / (x + j)
_LANCZOS_C0 = 1.000000000190015
_LANCZOS_COF = (76.18009172947146, -86.50532032941677, 24.01409824083091,
                -1.231739572450155, 0.1208650973866179e-2, -0.5395239384953e-5)
_SQRT_2PI = 2.5066282746310005


def _collapsed_lanczos():
    """Collapse ser(x) = c0 + sum cof_j/(x+j) into N(x)/D(x), degree 6/6.

    Done once at import in float64; in-kernel we evaluate both polynomials with
    Horner on the VPU so the EUP only sees one divide instead of six partial
    fractions.
    """
    den = np.poly1d([1.0])
    for j in range(1, 7):
        den = den * np.poly1d([1.0, float(j)])          # (x + j)
    num = _LANCZOS_C0 * den
    for j in range(1, 7):
        term = np.poly1d([1.0])
        for k in range(1, 7):
            if k != j:
                term = term * np.poly1d([1.0, float(k)])
        num = num + _LANCZOS_COF[j - 1] * term
    return (tuple(float(v) for v in num.coeffs),
            tuple(float(v) for v in den.coeffs))


_LANCZOS_NUM, _LANCZOS_DEN = _collapsed_lanczos()

_NATIVE_DTYPES = (np.dtype(jnp.float32), np.dtype(jnp.bfloat16))


def _horner(x, coeffs):
    acc = jnp.full_like(x, coeffs[0])
    for c in coeffs[1:]:
        acc = acc * x + c
    return acc


def _round_up(a, b):
    return -(-a // b) * b


def _num_tensorcores():
    """Best-effort TensorCore count; 2 is a safe default (no-op on 1-TC chips)."""
    try:
        info = pltpu.get_tpu_info()
        for name in ("num_cores", "core_count", "num_tensorcores", "cores_per_chip"):
            v = getattr(info, name, None)
            if isinstance(v, int) and v > 0:
                return v
    except Exception:
        pass
    return 2


def _gengauss_kernel(mean_ref, ooa_ref, beta_ref, tgt_ref, acc_ref, *,
                     n_valid, tile_r, steps_per_core, has_pad,
                     alpha_eps, beta_eps, resi_min, resi_max):
    f32 = jnp.float32
    mean = mean_ref[...].astype(f32)
    ooa = ooa_ref[...].astype(f32)
    beta = beta_ref[...].astype(f32)
    tgt = tgt_ref[...].astype(f32)

    ooa1 = ooa + alpha_eps
    beta1 = beta + beta_eps

    resi = jnp.abs(mean - tgt)
    resi = jnp.clip(resi * ooa1 * beta1, resi_min, resi_max)

    # lgamma(1/beta1) - log(beta1) == lgamma(1 + z), z = 1/beta1 (recurrence),
    # evaluated via the collapsed 6/6 Lanczos rational at w = 1 + z; the
    # -log(ooa1) term is folded into the same log.  EUP work per element:
    # 2 divides (exact -- approx reciprocal is too lossy here) + 2 logs.
    z = 1.0 / beta1
    w = z + 1.0
    t = z + 6.5                                   # == w + 5.5
    num = _horner(w, _LANCZOS_NUM)
    den = _horner(w, _LANCZOS_DEN)
    log_arg = (_SQRT_2PI * num) / (den * w * ooa1)
    l = resi + (z + 1.5) * jnp.log(t) - t + jnp.log(log_arg)

    @pl.when(pl.program_id(1) == 0)
    def _():
        acc_ref[...] = jnp.zeros_like(acc_ref)

    if has_pad:
        # Only the tile(s) containing / past the valid-element boundary take
        # the masked branch; interior tiles accumulate unmasked.
        # TODO(synk): element indices are int32; inputs with >= 2**31 elements
        # would need an int64 (or per-row) index here.
        tile_row0 = (pl.program_id(0) * steps_per_core + pl.program_id(1)) * tile_r
        contains_pad = (tile_row0 + tile_r) * _LANE > n_valid

        @pl.when(contains_pad)
        def _():
            rows = lax.broadcasted_iota(jnp.int32, (tile_r, _LANE), 0)
            lanes = lax.broadcasted_iota(jnp.int32, (tile_r, _LANE), 1)
            elem = (tile_row0 + rows) * _LANE + lanes
            acc_ref[...] += jnp.where(elem < n_valid, l, 0.0)

        @pl.when(jnp.logical_not(contains_pad))
        def _():
            acc_ref[...] += l
    else:
        acc_ref[...] += l


def gen_gauss_loss(mean, one_over_alpha, beta, target, *, reduction="mean",
                   alpha_eps=1e-4, beta_eps=1e-4,
                   resi_min=1e-4, resi_max=1000.0):
    assert mean.shape == one_over_alpha.shape == beta.shape == target.shape
    if reduction not in ("mean", "sum"):
        raise ValueError("Reduction not supported")
    n = int(mean.size)
    f32 = jnp.float32

    # Stream f32/bf16 natively (cast in-kernel); upcast only exotic dtypes.
    def canon(x):
        return x if x.dtype in _NATIVE_DTYPES else x.astype(f32)

    inputs = [canon(x) for x in (mean, one_over_alpha, beta, target)]

    # Row granularity so every dtype's packed (sublane, lane) tiling is legal.
    granule = max(8 * (4 // x.dtype.itemsize) for x in inputs)

    num_cores = _num_tensorcores()
    rows = -(-n // _LANE)
    rows_per_core = -(-rows // num_cores)
    steps = max(1, -(-rows_per_core // _MAX_TILE_R))
    tile_r = _round_up(-(-rows_per_core // steps), granule)
    total_rows = num_cores * steps * tile_r
    pad = total_rows * _LANE - n

    def prep(x):
        x = jnp.ravel(x)
        if pad:
            # TODO(synk): a fully copy-free ragged path would need a 1-D block
            # layout or a body+epilogue split; the zero pads here are discarded
            # by the in-kernel mask so their value is irrelevant.
            x = jnp.pad(x, (0, pad))
        return x.reshape(total_rows, _LANE)

    m2, a2, b2, t2 = (prep(x) for x in inputs)

    steps_per_core = steps
    in_spec = pl.BlockSpec((tile_r, _LANE),
                           lambda c, i: (c * steps_per_core + i, 0))
    out_spec = pl.BlockSpec((None, tile_r, _LANE), lambda c, i: (c, 0, 0))

    kernel = functools.partial(
        _gengauss_kernel,
        n_valid=n, tile_r=tile_r, steps_per_core=steps_per_core,
        has_pad=bool(pad),
        alpha_eps=float(alpha_eps), beta_eps=float(beta_eps),
        resi_min=float(resi_min), resi_max=float(resi_max))

    n_padded = total_rows * _LANE
    in_bytes = sum(int(x.size) * x.dtype.itemsize for x in (m2, a2, b2, t2))
    acc_bytes = num_cores * tile_r * _LANE * 4
    cost = pl.CostEstimate(flops=40 * n_padded,
                           transcendentals=4 * n_padded,
                           bytes_accessed=in_bytes + acc_bytes)

    acc = pl.pallas_call(
        kernel,
        out_shape=jax.ShapeDtypeStruct((num_cores, tile_r, _LANE), f32),
        grid_spec=pltpu.PrefetchScalarGridSpec(
            num_scalar_prefetch=0,
            grid=(num_cores, steps),
            in_specs=[in_spec] * 4,
            out_specs=out_spec,
        ),
        compiler_params=pltpu.CompilerParams(
            dimension_semantics=("parallel", "arbitrary"),
            vmem_limit_bytes=_VMEM_LIMIT_BYTES),
        cost_estimate=cost,
    )(m2, a2, b2, t2)

    total = jnp.sum(acc)

    # TODO(synk): the PyTorch module prints + returns None on intermediate NaNs;
    # that control flow has no in-kernel equivalent (check jnp.isnan outside).
    if reduction == "mean":
        return total / n
    return total


def _reference(mean, one_over_alpha, beta, target, *, reduction="mean",
               alpha_eps=1e-4, beta_eps=1e-4, resi_min=1e-4, resi_max=1000.0):
    one_over_alpha1 = one_over_alpha + alpha_eps
    beta1 = beta + beta_eps
    resi = jnp.clip(jnp.abs(mean - target) * one_over_alpha1 * beta1,
                    resi_min, resi_max)
    l = (resi - jnp.log(one_over_alpha1)
         + jax.scipy.special.gammaln(1.0 / beta1) - jnp.log(beta1))
    return l.mean() if reduction == "mean" else l.sum()


if __name__ == "__main__":
    key = jax.random.PRNGKey(0)
    ks = jax.random.split(key, 20)

    # 1) NCHW (2,4,16,16): n=2048 factors exactly -> zero-copy path, "mean".
    shape = (2, 4, 16, 16)
    mean = jax.random.normal(ks[0], shape, jnp.float32)
    target = jax.random.normal(ks[1], shape, jnp.float32)
    ooa = jax.random.uniform(ks[2], shape, jnp.float32, 0.5, 2.0)
    beta = jax.random.uniform(ks[3], shape, jnp.float32, 0.3, 3.0)
    loss = jax.block_until_ready(
        gen_gauss_loss(mean, ooa, beta, target, reduction="mean"))
    ref = _reference(mean, ooa, beta, target, reduction="mean")
    assert np.isfinite(float(loss))
    np.testing.assert_allclose(float(loss), float(ref), rtol=5e-3, atol=5e-3)

    # 2) Ragged shape -> exercises the in-kernel boundary mask, "sum".
    shape2 = (3, 5, 7, 11)
    mean2 = jax.random.normal(ks[4], shape2, jnp.float32)
    target2 = jax.random.normal(ks[5], shape2, jnp.float32)
    ooa2 = jax.random.uniform(ks[6], shape2, jnp.float32, 0.5, 2.0)
    beta2 = jax.random.uniform(ks[7], shape2, jnp.float32, 0.3, 3.0)
    loss2 = jax.block_until_ready(
        gen_gauss_loss(mean2, ooa2, beta2, target2, reduction="sum"))
    ref2 = _reference(mean2, ooa2, beta2, target2, reduction="sum")
    assert np.isfinite(float(loss2))
    np.testing.assert_allclose(float(loss2), float(ref2), rtol=5e-3, atol=5e-3)

    # 3) bf16 inputs stream natively (no wrapper upcast), "mean".
    shape3 = (1, 2, 32, 64)
    mean3 = jax.random.normal(ks[8], shape3, jnp.float32).astype(jnp.bfloat16)
    target3 = jax.random.normal(ks[9], shape3, jnp.float32).astype(jnp.bfloat16)
    ooa3 = jax.random.uniform(ks[10], shape3, jnp.float32, 0.5, 2.0).astype(jnp.bfloat16)
    beta3 = jax.random.uniform(ks[11], shape3, jnp.float32, 0.3, 3.0).astype(jnp.bfloat16)
    loss3 = jax.block_until_ready(
        gen_gauss_loss(mean3, ooa3, beta3, target3, reduction="mean"))
    ref3 = _reference(mean3.astype(jnp.float32), ooa3.astype(jnp.float32),
                      beta3.astype(jnp.float32), target3.astype(jnp.float32),
                      reduction="mean")
    assert np.isfinite(float(loss3))
    np.testing.assert_allclose(float(loss3), float(ref3), rtol=5e-3, atol=5e-3)

    # 4) Broad beta domain (0.02 .. 50) to validate the collapsed Lanczos form.
    shape4 = (1, 1, 64, 128)
    mean4 = jax.random.normal(ks[12], shape4, jnp.float32)
    target4 = jax.random.normal(ks[13], shape4, jnp.float32)
    ooa4 = jnp.exp(jax.random.uniform(ks[14], shape4, jnp.float32,
                                      float(np.log(0.1)), float(np.log(10.0))))
    beta4 = jnp.exp(jax.random.uniform(ks[15], shape4, jnp.float32,
                                       float(np.log(0.02)), float(np.log(50.0))))
    loss4 = jax.block_until_ready(
        gen_gauss_loss(mean4, ooa4, beta4, target4, reduction="mean"))
    ref4 = _reference(mean4, ooa4, beta4, target4, reduction="mean")
    assert np.isfinite(float(loss4))
    np.testing.assert_allclose(float(loss4), float(ref4), rtol=5e-3, atol=5e-3)

    print("KERNEL_OK")
</pallas_src>

<mosaic_0001>
module attributes {stable_mosaic.version = 11 : i64} {
  func.func @_gengauss_kernel(%arg0: i32, %arg1: i32, %arg2: memref<8x128xf32, #tpu.memory_space<vmem>>, %arg3: memref<8x128xf32, #tpu.memory_space<vmem>>, %arg4: memref<8x128xf32, #tpu.memory_space<vmem>>, %arg5: memref<8x128xf32, #tpu.memory_space<vmem>>, %arg6: memref<1x8x128xf32, #tpu.memory_space<vmem>>) attributes {dimension_semantics = [#tpu.dimension_semantics<parallel>, #tpu.dimension_semantics<arbitrary>], iteration_bounds = array<i64: 2, 1>, scalar_prefetch = 0 : i64, scratch_operands = 0 : i64, tpu.core_type = #tpu.core_type<tc>, window_params = [{transform_indices = @transform_0, window_bounds = array<i64: 8, 128>}, {transform_indices = @transform_1, window_bounds = array<i64: 8, 128>}, {transform_indices = @transform_2, window_bounds = array<i64: 8, 128>}, {transform_indices = @transform_3, window_bounds = array<i64: 8, 128>}, {transform_indices = @transform_4, window_bounds = array<i64: 1, 8, 128>}]} {
    %c0 = arith.constant 0 : index
    %c0_0 = arith.constant 0 : index
    %0 = vector.load %arg2[%c0, %c0_0] : memref<8x128xf32, #tpu.memory_space<vmem>>, vector<8x128xf32>
    %c0_1 = arith.constant 0 : index
    %c0_2 = arith.constant 0 : index
    %1 = vector.load %arg3[%c0_1, %c0_2] : memref<8x128xf32, #tpu.memory_space<vmem>>, vector<8x128xf32>
    %c0_3 = arith.constant 0 : index
    %c0_4 = arith.constant 0 : index
    %2 = vector.load %arg4[%c0_3, %c0_4] : memref<8x128xf32, #tpu.memory_space<vmem>>, vector<8x128xf32>
    %c0_5 = arith.constant 0 : index
    %c0_6 = arith.constant 0 : index
    %3 = vector.load %arg5[%c0_5, %c0_6] : memref<8x128xf32, #tpu.memory_space<vmem>>, vector<8x128xf32>
    %cst = arith.constant 9.99999974E-5 : f32
    %4 = vector.broadcast %cst : f32 to vector<8x128xf32>
    %5 = arith.addf %1, %4 : vector<8x128xf32>
    %cst_7 = arith.constant 9.99999974E-5 : f32
    %6 = vector.broadcast %cst_7 : f32 to vector<8x128xf32>
    %7 = arith.addf %2, %6 : vector<8x128xf32>
    %8 = arith.subf %0, %3 : vector<8x128xf32>
    %9 = math.absf %8 : vector<8x128xf32>
    %10 = arith.mulf %9, %5 : vector<8x128xf32>
    %11 = arith.mulf %10, %7 : vector<8x128xf32>
    %cst_8 = arith.constant 9.99999974E-5 : f32
    %cst_9 = arith.constant 1.000000e+03 : f32
    %12 = vector.broadcast %cst_8 : f32 to vector<8x128xf32>
    %13 = arith.maximumf %12, %11 : vector<8x128xf32>
    %14 = vector.broadcast %cst_9 : f32 to vector<8x128xf32>
    %15 = arith.minimumf %14, %13 : vector<8x128xf32>
    %cst_10 = arith.constant 1.000000e+00 : f32
    %16 = vector.broadcast %cst_10 : f32 to vector<8x128xf32>
    %17 = arith.divf %16, %7 : vector<8x128xf32>
    %cst_11 = arith.constant 1.000000e+00 : f32
    %18 = vector.broadcast %cst_11 : f32 to vector<8x128xf32>
    %19 = arith.addf %17, %18 : vector<8x128xf32>
    %cst_12 = arith.constant 6.500000e+00 : f32
    %20 = vector.broadcast %cst_12 : f32 to vector<8x128xf32>
    %21 = arith.addf %17, %20 : vector<8x128xf32>
    %cst_13 = arith.constant 1.000000e+00 : f32
    %22 = vector.broadcast %cst_13 : f32 to vector<8x128xf32>
    %23 = arith.mulf %22, %19 : vector<8x128xf32>
    %cst_14 = arith.constant 33.4583321 : f32
    %24 = vector.broadcast %cst_14 : f32 to vector<8x128xf32>
    %25 = arith.addf %23, %24 : vector<8x128xf32>
    %26 = arith.mulf %25, %19 : vector<8x128xf32>
    %cst_15 = arith.constant 466.334198 : f32
    %27 = vector.broadcast %cst_15 : f32 to vector<8x128xf32>
    %28 = arith.addf %26, %27 : vector<8x128xf32>
    %29 = arith.mulf %28, %19 : vector<8x128xf32>
    %cst_16 = arith.constant 3465.70947 : f32
    %30 = vector.broadcast %cst_16 : f32 to vector<8x128xf32>
    %31 = arith.addf %29, %30 : vector<8x128xf32>
    %32 = arith.mulf %31, %19 : vector<8x128xf32>
    %cst_17 = arith.constant 14484.9141 : f32
    %33 = vector.broadcast %cst_17 : f32 to vector<8x128xf32>
    %34 = arith.addf %32, %33 : vector<8x128xf32>
    %35 = arith.mulf %34, %19 : vector<8x128xf32>
    %cst_18 = arith.constant 32281.0645 : f32
    %36 = vector.broadcast %cst_18 : f32 to vector<8x128xf32>
    %37 = arith.addf %35, %36 : vector<8x128xf32>
    %38 = arith.mulf %37, %19 : vector<8x128xf32>
    %cst_19 = arith.constant 29969.5938 : f32
    %39 = vector.broadcast %cst_19 : f32 to vector<8x128xf32>
    %40 = arith.addf %38, %39 : vector<8x128xf32>
    %cst_20 = arith.constant 1.000000e+00 : f32
    %41 = vector.broadcast %cst_20 : f32 to vector<8x128xf32>
    %42 = arith.mulf %41, %19 : vector<8x128xf32>
    %cst_21 = arith.constant 2.100000e+01 : f32
    %43 = vector.broadcast %cst_21 : f32 to vector<8x128xf32>
    %44 = arith.addf %42, %43 : vector<8x128xf32>
    %45 = arith.mulf %44, %19 : vector<8x128xf32>
    %cst_22 = arith.constant 1.750000e+02 : f32
    %46 = vector.broadcast %cst_22 : f32 to vector<8x128xf32>
    %47 = arith.addf %45, %46 : vector<8x128xf32>
    %48 = arith.mulf %47, %19 : vector<8x128xf32>
    %cst_23 = arith.constant 7.350000e+02 : f32
    %49 = vector.broadcast %cst_23 : f32 to vector<8x128xf32>
    %50 = arith.addf %48, %49 : vector<8x128xf32>
    %51 = arith.mulf %50, %19 : vector<8x128xf32>
    %cst_24 = arith.constant 1.624000e+03 : f32
    %52 = vector.broadcast %cst_24 : f32 to vector<8x128xf32>
    %53 = arith.addf %51, %52 : vector<8x128xf32>
    %54 = arith.mulf %53, %19 : vector<8x128xf32>
    %cst_25 = arith.constant 1.764000e+03 : f32
    %55 = vector.broadcast %cst_25 : f32 to vector<8x128xf32>
    %56 = arith.addf %54, %55 : vector<8x128xf32>
    %57 = arith.mulf %56, %19 : vector<8x128xf32>
    %cst_26 = arith.constant 7.200000e+02 : f32
    %58 = vector.broadcast %cst_26 : f32 to vector<8x128xf32>
    %59 = arith.addf %57, %58 : vector<8x128xf32>
    %cst_27 = arith.constant 2.50662827 : f32
    %60 = vector.broadcast %cst_27 : f32 to vector<8x128xf32>
    %61 = arith.mulf %60, %40 : vector<8x128xf32>
    %62 = arith.mulf %59, %19 : vector<8x128xf32>
    %63 = arith.mulf %62, %5 : vector<8x128xf32>
    %64 = arith.divf %61, %63 : vector<8x128xf32>
    %cst_28 = arith.constant 1.500000e+00 : f32
    %65 = vector.broadcast %cst_28 : f32 to vector<8x128xf32>
    %66 = arith.addf %17, %65 : vector<8x128xf32>
    %67 = math.log %21 : vector<8x128xf32>
    %68 = arith.mulf %66, %67 : vector<8x128xf32>
    %69 = arith.addf %15, %68 : vector<8x128xf32>
    %70 = arith.subf %69, %21 : vector<8x128xf32>
    %71 = math.log %64 : vector<8x128xf32>
    %72 = arith.addf %70, %71 : vector<8x128xf32>
    %c0_i32 = arith.constant 0 : i32
    %73 = arith.cmpi eq, %arg1, %c0_i32 : i32
    %74 = arith.extui %73 : i1 to i32
    %c0_i32_29 = arith.constant 0 : i32
    %75 = arith.cmpi ne, %74, %c0_i32_29 : i32
    scf.if %75 {
      %cst_36 = arith.constant 0.000000e+00 : f32
      %82 = vector.broadcast %cst_36 : f32 to vector<8x128xf32>
      %c0_37 = arith.constant 0 : index
      %c0_38 = arith.constant 0 : index
      %c0_39 = arith.constant 0 : index
      %83 = vector.load %arg6[%c0_37, %c0_38, %c0_39] : memref<1x8x128xf32, #tpu.memory_space<vmem>>, vector<1x8x128xf32>
      %84 = vector.shape_cast %83 : vector<1x8x128xf32> to vector<8x128xf32>
      %85 = vector.shape_cast %82 : vector<8x128xf32> to vector<1x8x128xf32>
      tpu.vector_store %arg6[%c0_37, %c0_38, %c0_39], %85 {strides = array<i32>} : memref<1x8x128xf32, #tpu.memory_space<vmem>>, vector<1x8x128xf32>,
    } else {
    }
    %c0_30 = arith.constant 0 : index
    %c0_31 = arith.constant 0 : index
    %c0_32 = arith.constant 0 : index
    %76 = vector.load %arg6[%c0_30, %c0_31, %c0_32] : memref<1x8x128xf32, #tpu.memory_space<vmem>>, vector<1x8x128xf32>
    %77 = vector.shape_cast %76 : vector<1x8x128xf32> to vector<8x128xf32>
    %78 = arith.addf %77, %72 : vector<8x128xf32>
    %c0_33 = arith.constant 0 : index
    %c0_34 = arith.constant 0 : index
    %c0_35 = arith.constant 0 : index
    %79 = vector.load %arg6[%c0_33, %c0_34, %c0_35] : memref<1x8x128xf32, #tpu.memory_space<vmem>>, vector<1x8x128xf32>
    %80 = vector.shape_cast %79 : vector<1x8x128xf32> to vector<8x128xf32>
    %81 = vector.shape_cast %78 : vector<8x128xf32> to vector<1x8x128xf32>
    tpu.vector_store %arg6[%c0_33, %c0_34, %c0_35], %81 {strides = array<i32>} : memref<1x8x128xf32, #tpu.memory_space<vmem>>, vector<1x8x128xf32>,
    return
  }
  func.func @transform_0(%arg0: i32, %arg1: i32) -> (i32, i32) {
    %c1_i32 = arith.constant 1 : i32
    %0 = arith.muli %arg0, %c1_i32 : i32
    %1 = arith.addi %0, %arg1 : i32
    %c0_i32 = arith.constant 0 : i32
    %c0_i32_0 = arith.constant 0 : i32
    return %1, %c0_i32 : i32, i32
  }
  func.func @transform_1(%arg0: i32, %arg1: i32) -> (i32, i32) {
    %c1_i32 = arith.constant 1 : i32
    %0 = arith.muli %arg0, %c1_i32 : i32
    %1 = arith.addi %0, %arg1 : i32
    %c0_i32 = arith.constant 0 : i32
    %c0_i32_0 = arith.constant 0 : i32
    return %1, %c0_i32 : i32, i32
  }
  func.func @transform_2(%arg0: i32, %arg1: i32) -> (i32, i32) {
    %c1_i32 = arith.constant 1 : i32
    %0 = arith.muli %arg0, %c1_i32 : i32
    %1 = arith.addi %0, %arg1 : i32
    %c0_i32 = arith.constant 0 : i32
    %c0_i32_0 = arith.constant 0 : i32
    return %1, %c0_i32 : i32, i32
  }
  func.func @transform_3(%arg0: i32, %arg1: i32) -> (i32, i32) {
    %c1_i32 = arith.constant 1 : i32
    %0 = arith.muli %arg0, %c1_i32 : i32
    %1 = arith.addi %0, %arg1 : i32
    %c0_i32 = arith.constant 0 : i32
    %c0_i32_0 = arith.constant 0 : i32
    return %1, %c0_i32 : i32, i32
  }
  func.func @transform_4(%arg0: i32, %arg1: i32) -> (i32, i32, i32) {
    %c0_i32 = arith.constant 0 : i32
    %c0_i32_0 = arith.constant 0 : i32
    %c0_i32_1 = arith.constant 0 : i32
    return %arg0, %c0_i32, %c0_i32_0 : i32, i32, i32
  }
}

</mosaic_0001>

<bundles_post_ra>
// kernel: tpu_custom_call.1
= control target key start
LH: loop header
LB: loop body
LE: loop exit
PB: predicated region body
PF: predicated region fallthrough
CT: control target
= control target key end

     0   :  { %s1126_s0 = inlined_call_operand.hbm [shape: f32[16,128], index: 0, kind: input, shape index: {}]   ;;  %s1127_s1 = inlined_call_operand.hbm [shape: f32[16,128], index: 1, kind: input, shape index: {}]   ;;  %s1128_s2 = inlined_call_operand.hbm [shape: f32[16,128], index: 2, kind: input, shape index: {}]   ;;  %s1129_s3 = inlined_call_operand.hbm [shape: f32[16,128], index: 3, kind: input, shape index: {}]   ;;  %s1130_s4 = inlined_call_operand.hbm [shape: f32[2,8,128], index: 4, kind: output, shape index: {}]  }
   0x1   :  { %1134 = sst [smem:[#allocation19_spill]] %s1127_s1 }
   0x2   :  { %9 = vsyncpa [#allocation3], 0 }
   0x3   :  { %11 = vsyncpa [#allocation3 + $0x1], 0 }
   0x4   :  { %12 = vsyncpa [#allocation6], 0 }
   0x5   :  { %14 = vsyncpa [#allocation6 + $0x1], 0 }
   0x6   :  { %15 = vsyncpa [#allocation9], 0 }
   0x7   :  { %17 = vsyncpa [#allocation9 + $0x1], 0 }
   0x8   :  { %18 = vsyncpa [#allocation4], 0 }
   0x9   :  { %20 = vsyncpa [#allocation4 + $0x1], 0  ;;  %s911_s15 = smov 0   ;;  %s913_s16 = smov 0  }
   0xa   :  { %s915_s17 = smov 0   ;;  %s917_s18 = smov 0  }
   0xb   :  { %s919_s19 = smov 0   ;;  %s921_s20 = smov 0  }
   0xc LB: > { %1135 = sst [smem:[#allocation15_spill]] %s867_s17  ;;  %s942_s21 = sadd.s32 4294967295, %s879_s20   ;;  %s879_s20 = sphi %s921_s20, %s26_s20   ;;  %s875_s19 = sphi %s919_s19, %s1150_s19   ;;  %s871_s18 = sphi %s917_s18, %s1149_s18   ;;  %s867_s17 = sphi %s915_s17, %s1148_s17   ;;  %s863_s16 = sphi %s913_s16, %s1152_s16   ;;  %s859_s15 = sphi %s911_s15, %s1151_s15  }
   0xd   : > { %1136 = sst [smem:[#allocation16_spill]] %s875_s19  ;;  %s572_s22 = sadd.s32 4294967294, %s879_s20  }
   0xe   : > { %s38_s23 = sadd.s32 1, %s875_s19  ;;  %s47_s24 = sadd.s32 1, %s867_s17 }
   0xf   : > { %p40_p0 = scmp.ge.s32.totalorder %s38_s23, 2  ;;  %p54_p1 = scmp.ne.s32.totalorder %s867_s17, %s863_s16 }
  0x10   : > { %p55_p2 = scmp.eq.s32.totalorder %s879_s20, 0  ;;  %p60_p3 = scmp.ne.s32.totalorder %s863_s16, %s859_s15 }
  0x11   : > { %s1154_s23 = smov (%p40_p0, %s38_s23), 0  ;;  %p61_p5 = scmp.eq.s32.totalorder %s942_s21, 0 }
  0x12   : > { %1137 = sst [smem:[#allocation17_spill]] %s1154_s23  ;;  %p954_p4 = por %p55_p2, %p54_p1 }
  0x13   : > { %s44_s26 = ssub.s32 %s875_s19, %s1154_s23  ;;  %p168_p6 = scmp.eq.s32.totalorder %s942_s21, 1 }
  0x14   : > { %p45_p7 = scmp.eq.s32.totalorder %s44_s26, 0  ;;  %p962_p8 = por %p61_p5, %p60_p3 }
  0x15   : > { %p966_p9 = por %p168_p6, %p54_p1  ;;  %p174_p10 = scmp.eq.s32.totalorder %s572_s22, 1 }
  0x16   : > { %s971_s29 = scalar_select %p45_p7, %s867_s17, %s47_s24  }
  0x17   : > { %p973_p11 = por %p174_p10, %p60_p3  ;;  %p620_p13 = scmp.lt.s32.totalorder %s879_s20, 2 }
  0x18   : > { %1141 = sst [smem:[#allocation18_spill]] %s971_s29  ;;  %s980_s5 = sand.u32 1, %s867_s17  }
  0x19   : > { %s983_s6 = sshll.u32 %s980_s5, 3  ;;  %s986_s7 = sshll.u32 %s875_s19, 7 }
  0x1a   : > { %p990_p0 = pnand %p620_p13, %p954_p4  ;;  %s213_s9 = sand.u32 1, %s879_s20  }
  0x1b   : > { %s1144_s1 = sld [smem:[#allocation19_spill]]  ;;  %s217_s13 = scalar_lea.vmem [#allocation5], %s983_s6 }
  0x1c   : > { %s225_s14 = sshll.u32 %s217_s13, 4  ;;  %p583_p1 = scmp.ge.s32.totalorder %s879_s20, 1  ;;  %s226_s14 = int_to_ptr.vmem [resolvable:$true] %s225_s14 }
  0x1d   : > { %p268_p2 = scmp.lt.s32.totalorder %s879_s20, 3  ;;  %s1002_s22 = scalar_lea.sflag [#allocation6], %s213_s9 }
  0x1e   : > { %p681_p3 = pneg %p990_p0  ;;  %s692_s24 = scalar_lea.vmem %s226_s14, 128 }
  0x1f   : > { %p693_p4 = scmp.ne.s32.totalorder %s226_s14, %s692_s24  ;;  %s881_s25 = smov [#allocation5]  }
  0x20   : > { %s697_s26 = sshll.u32 %s881_s25, 4  ;;  %s698_s26 = int_to_ptr.vmem [resolvable:$false] %s697_s26 }
  0x21   : > { %s223_s12 = scalar_lea.hbm %s1144_s1, %s986_s7  ;;  %p695_p5 = pnand %p693_p4, %p681_p3 }
  0x22   : > { %s699_s10 = scalar_lea.vmem %s698_s26, 256  ;;  %p700_p7 = scmp.lt.s32.totalorder %s226_s14, %s698_s26 }
  0x23   : > { %p696_p6 = pneg %p695_p5  ;;  %p701_p10 = scmp.lt.s32.totalorder %s699_s10, %s692_s24 }
  0x25   : > { %p702_p13 = por %p701_p10, %p700_p7 }
  0x27   : > { %p703_p12 = pnand %p702_p13, %p696_p6 }
  0x29   : > { %706 = shalt.err (!%p703_p12)
}
  0x2a   : > { %609 = dma.hbm_to_vmem [thread:$0]  (!%p990_p0), %s223_s12, 128, %s226_s14, %s1002_s22  }
  0x2b   : > { %p1016_p4 = pnand %p583_p1, %p268_p2  ;;  %s204_s24 = scalar_lea.hbm %s1126_s0, %s986_s7 }
  0x2c   : > { %s198_s25 = scalar_lea.vmem [#allocation2], %s983_s6  ;;  %s242_s23 = scalar_lea.hbm %s1128_s2, %s986_s7 }
  0x2d   : > { %s206_s26 = sshll.u32 %s198_s25, 4  ;;  %s195_s19 = scalar_lea.sflag [#allocation3], %s980_s5  ;;  %s207_s26 = int_to_ptr.vmem [resolvable:$true] %s206_s26 }
  0x2e   : > { %s720_s29 = scalar_lea.vmem %s207_s26, 128  ;;  %s882_s12 = smov [#allocation2]  }
  0x2f   : > { %p721_p12 = scmp.ne.s32.totalorder %s207_s26, %s720_s29  ;;  %s725_s14 = sshll.u32 %s882_s12, 4  ;;  %s726_s14 = int_to_ptr.vmem [resolvable:$false] %s725_s14 }
  0x30   : > { %s727_s17 = scalar_lea.vmem %s726_s14, 256  ;;  %p728_p5 = scmp.lt.s32.totalorder %s207_s26, %s726_s14 }
  0x31   : > { %p723_p1 = pnand %p721_p12, %p681_p3  ;;  %p729_p6 = scmp.lt.s32.totalorder %s727_s17, %s720_s29 }
  0x33   : > { %p724_p2 = pneg %p723_p1  ;;  %p730_p7 = por %p729_p6, %p728_p5 }
  0x35   : > { %p731_p10 = pnand %p730_p7, %p724_p2 }
  0x37   : > { %734 = shalt.err (!%p731_p10)
}
  0x38   : > { %606 = dma.hbm_to_vmem [thread:$0]  (!%p990_p0), %s204_s24, 128, %s207_s26, %s195_s19  }
  0x39   : > { %s236_s1 = scalar_lea.vmem [#allocation7], %s983_s6  ;;  %s883_s25 = smov [#allocation7]  }
  0x3a   : > { %s244_s11 = sshll.u32 %s236_s1, 4  ;;  %s753_s10 = sshll.u32 %s883_s25, 4  ;;  %s245_s11 = int_to_ptr.vmem [resolvable:$true] %s244_s11  ;;  %s754_s10 = int_to_ptr.vmem [resolvable:$false] %s753_s10 }
  0x3b   : > { %s748_s13 = scalar_lea.vmem %s245_s11, 128  ;;  %s755_s17 = scalar_lea.vmem %s754_s10, 256 }
  0x3c   : > { %p749_p13 = scmp.ne.s32.totalorder %s245_s11, %s748_s13  ;;  %p756_p2 = scmp.lt.s32.totalorder %s245_s11, %s754_s10 }
  0x3d   : > { %p757_p5 = scmp.lt.s32.totalorder %s755_s17, %s748_s13 }
  0x3e   : > { %p751_p12 = pnand %p749_p13, %p681_p3 }
  0x3f   : > { %p758_p6 = por %p757_p5, %p756_p2 }
  0x40   : > { %p752_p1 = pneg %p751_p12 }
  0x42   : > { %p759_p7 = pnand %p758_p6, %p752_p1 }
  0x44   : > { %762 = shalt.err (!%p759_p7)
}
  0x45   : > { %612 = dma.hbm_to_vmem [thread:$0]  (!%p990_p0), %s242_s23, 128, %s245_s11, %s1002_s22  }
  0x46   : > { %s261_s12 = scalar_lea.hbm %s1129_s3, %s986_s7  ;;  %s255_s14 = scalar_lea.vmem [#allocation8], %s983_s6 }
  0x47   : > { %s263_s1 = sshll.u32 %s255_s14, 4  ;;  %s252_s13 = scalar_lea.sflag [#allocation9], %s980_s5  ;;  %s264_s1 = int_to_ptr.vmem [resolvable:$true] %s263_s1 }
  0x48   : > { %s776_s25 = scalar_lea.vmem %s264_s1, 128  ;;  %s884_s10 = smov [#allocation8]  }
  0x49   : > { %p777_p10 = scmp.ne.s32.totalorder %s264_s1, %s776_s25  ;;  %s781_s17 = sshll.u32 %s884_s10, 4  ;;  %s782_s17 = int_to_ptr.vmem [resolvable:$false] %s781_s17 }
  0x4a   : > { %s783_s19 = scalar_lea.vmem %s782_s17, 256  ;;  %p784_p1 = scmp.lt.s32.totalorder %s264_s1, %s782_s17 }
  0x4b   : > { %p779_p13 = pnand %p777_p10, %p681_p3  ;;  %p785_p2 = scmp.lt.s32.totalorder %s783_s19, %s776_s25 }
  0x4d   : > { %p780_p12 = pneg %p779_p13  ;;  %p786_p5 = por %p785_p2, %p784_p1 }
  0x4f   : > { %p787_p6 = pnand %p786_p5, %p780_p12 }
  0x51   : > { %790 = shalt.err (!%p787_p6)
}
  0x52   : > { %615 = dma.hbm_to_vmem [thread:$0]  (!%p990_p0), %s261_s12, 128, %s264_s1, %s252_s13  }
  0x53   : > { %272 = sbr.rel (%p1016_p4) target bundleno = 187 (0xbb), region = 36  ;;  %s1061_s23 = sand.u32 (!%p1016_p4), 1, %s863_s16  }
  0x54   : > { %s1064_s5 = sshll.u32 (!%p1016_p4), %s1061_s23, 3  ;;  %s275_s6 = scalar_lea.sflag (!%p1016_p4), [#allocation3], %s1061_s23 }
  0x55   : > { %s278_s7 = scalar_lea.vmem (!%p1016_p4), [#allocation2], %s1064_s5 }
  0x58   : > { %842 = dma.done.wait (%p962_p8), %s275_s6, 128  }
  0x59   : > { %844 = vsyncadd (%p962_p8), %s275_s6, 4294967168  ;;  %s283_s8 = sand.u32 1, %s942_s21   ;;  %s287_s9 = scalar_lea.vmem [#allocation5], %s1064_s5 }
  0x5a   : > { %s284_s22 = scalar_lea.sflag [#allocation6], %s283_s8 }
  0x5b   : > { %846 = dma.done.wait (%p962_p8), %s284_s22, 256  }
  0x5c   : > { %848 = vsyncadd (%p962_p8), %s284_s22, 4294967040  ;;  %s296_s11 = scalar_lea.vmem [#allocation7], %s1064_s5  ;;  %s302_s29 = scalar_lea.sflag [#allocation9], %s1061_s23 }
  0x5d   : > { %s305_s24 = scalar_lea.vmem [#allocation8], %s1064_s5 }
  0x5e   : > { %850 = dma.done.wait (%p962_p8), %s302_s29, 128  }
  0x5f   : > { %852 = vsyncadd (%p962_p8), %s302_s29, 4294967168  ;;  %v351_v0 = vld [vmem:[%s296_s11] sm:$0xff]  ;;  %v352_v3 = vld [vmem:[%s305_s24] sm:$0xff]  ;;  %s590_s21 = sshll.u32 %s871_s18, 7  ;;  %s344_s27 = scalar_lea.vmem [#allocation10], %s1064_s5 }
  0x60   : > { %v354_v1 = vadd.f32 0.0001, %v351_v0  ;;  %v349_v2 = vld [vmem:[%s278_s7] sm:$0xff]  ;;  %v350_v6 = vld [vmem:[%s287_s9] sm:$0xff]  ;;  %s423_s26 = sshll.u32 %s344_s27, 4  ;;  %s421_s1 = scalar_lea.hbm %s1130_s4, %s590_s21  ;;  %s424_s26 = int_to_ptr.vmem [resolvable:$true] %s423_s26 }
  0x61   : > { %v355_v4 = vsub.f32 %v349_v2, %v352_v3  ;;  %v353_v10 = vadd.f32 0.0001, %v350_v6  ;;  %s410_s13 = scalar_lea.sflag [#allocation4], %s1061_s23  ;;  %s791_s25 = scalar_lea.vmem %s424_s26, 128 }
  0x62   : > { %671 = vrcp.f32 %v354_v1  ;;  %p792_p8 = scmp.ne.s32.totalorder %s424_s26, %s791_s25  ;;  %s885_s10 = smov [#allocation10]  }
  0x63   : > { %v356_v7 = vand.u32 2147483647, %v355_v4  ;;  %s795_s17 = sshll.u32 %s885_s10, 4  ;;  %s796_s17 = int_to_ptr.vmem [resolvable:$false] %s795_s17 }
  0x64   : > { %p793_p0 = pnand %p792_p8, %p966_p9  ;;  %s797_s19 = scalar_lea.vmem %s796_s17, 256 }
  0x65   : > { %v357_v13 = vmul.f32 %v356_v7, %v353_v10  ;;  %p798_p4 = scmp.lt.s32.totalorder %s424_s26, %s796_s17  ;;  %p799_p7 = scmp.lt.s32.totalorder %s797_s19, %s791_s25 }
  0x66   : > { %p794_p3 = pneg %p793_p0 }
  0x67   : > { %v358_v18 = vmul.f32 %v357_v13, %v354_v1  ;;  %p800_p10 = por %p799_p7, %p798_p4 }
  0x69   : > { %v359_v23 = vmax.f32 %v358_v18, 0.0001  ;;  %p801_p13 = pnand %p800_p10, %p794_p3 }
  0x6b   : > { %v360_v29 = vmin.f32 %v359_v23, 1000.0 }
  0x6f   : > { %v672_v5 = vpop.eup %671 }
  0x70   : > { %v363_v8 = vadd.f32 1.0, %v672_v5  ;;  %v364_v9 = vadd.f32 6.5, %v672_v5  ;;  %v392_v27 = vadd.f32 1.5, %v672_v5 }
  0x72   : > { %v365_v11 = vadd.f32 33.458332, %v363_v8  ;;  %v376_v12 = vadd.f32 21.0, %v363_v8  ;;  %673 = vlog2.f32 %v364_v9 }
  0x74   : > { %v366_v14 = vmul.f32 %v365_v11, %v363_v8  ;;  %v377_v15 = vmul.f32 %v376_v12, %v363_v8 }
  0x76   : > { %v367_v16 = vadd.f32 466.3342, %v366_v14  ;;  %v378_v17 = vadd.f32 175.0, %v377_v15 }
  0x78   : > { %v368_v19 = vmul.f32 %v367_v16, %v363_v8  ;;  %v379_v20 = vmul.f32 %v378_v17, %v363_v8 }
  0x7a   : > { %v369_v21 = vadd.f32 3465.7095, %v368_v19  ;;  %v380_v22 = vadd.f32 735.0, %v379_v20 }
  0x7c   : > { %v381_v24 = vmul.f32 %v380_v22, %v363_v8  ;;  %v370_v25 = vmul.f32 %v369_v21, %v363_v8 }
  0x7e   : > { %v382_v26 = vadd.f32 1624.0, %v381_v24  ;;  %v371_v32 = vadd.f32 14484.914, %v370_v25 }
  0x7f   : > { %v674_v28 = vpop.eup %673 }
  0x80   : > { %v383_v30 = vmul.f32 %v382_v26, %v363_v8  ;;  %v394_v31 = vmul.f32 0.6931472, %v674_v28  ;;  %v372_v37 = vmul.f32 %v371_v32, %v363_v8 }
  0x82   : > { %v384_v33 = vadd.f32 1764.0, %v383_v30  ;;  %v395_v34 = vmul.f32 %v394_v31, %v392_v27  ;;  %v373_v40 = vadd.f32 32281.064, %v372_v37 }
  0x84   : > { %v385_v35 = vmul.f32 %v384_v33, %v363_v8  ;;  %v396_v36 = vadd.f32 %v395_v34, %v360_v29  ;;  %v374_v42 = vmul.f32 %v373_v40, %v363_v8 }
  0x86   : > { %v386_v38 = vadd.f32 720.0, %v385_v35  ;;  %v375_v43 = vadd.f32 29969.594, %v374_v42  ;;  %v397_v47 = vsub.f32 %v396_v36, %v364_v9 }
  0x88   : > { %v388_v39 = vmul.f32 %v386_v38, %v363_v8  ;;  %v387_v44 = vmul.f32 2.5066283, %v375_v43 }
  0x8a   : > { %v389_v41 = vmul.f32 %v388_v39, %v353_v10 }
  0x8c   : > { %675 = vrcp.f32 %v389_v41 }
  0x99   : > { %v676_v45 = vpop.eup %675 }
  0x9a   : > { %v391_v46 = vmul.f32 %v676_v45, %v387_v44 }
  0x9c   : > { %677 = vlog2.f32 %v391_v46 }
  0xa9   : > { %v678_v48 = vpop.eup %677 }
  0xaa   : > { %v399_v49 = vmul.f32 0.6931472, %v678_v48 }
  0xac   : > { %v400_v50 = vadd.f32 %v399_v49, %v397_v47 }
  0xae   : > { %408 = vst [vmem:[%s344_s27] sm:$0xff] %v400_v50 }
  0xaf   : > { %804 = shalt.err (!%p801_p13)
}
  0xb0   : > { %s805_s18 = scalar_lea.hbm %s421_s1, 128  ;;  %s809_s6 = scalar_lea.hbm %s1130_s4, 256 }
  0xb1   : > { %p806_p12 = scmp.ne.s32.totalorder %s421_s1, %s805_s18  ;;  %p810_p5 = scmp.lt.s32.totalorder %s421_s1, %s1130_s4 }
  0xb2   : > { %p811_p6 = scmp.lt.s32.totalorder %s809_s6, %s805_s18 }
  0xb3   : > { %p807_p1 = pnand %p806_p12, %p966_p9 }
  0xb4   : > { %p812_p8 = por %p811_p6, %p810_p5 }
  0xb5   : > { %p808_p2 = pneg %p807_p1 }
  0xb7   : > { %p813_p0 = pnand %p812_p8, %p808_p2 }
  0xb9   : > { %816 = shalt.err (!%p813_p0)
}
  0xba   : > { %601 = dma.vmem_to_hbm [thread:$0]  (%p966_p9), %s424_s26, 128, %s421_s1, %s410_s13  }
  0xbb PF: > { %s435_s22 = sand.u32 1, %s859_s15   ;;  %p1146_p3 = scmp.ge.s32.totalorder %s879_s20, 2 }
  0xbc   : > { %s436_s9 = scalar_lea.sflag [#allocation4], %s435_s22 }
  0xbd   : > { %p617_p4 = pnand %p1146_p3, %p973_p11 }
  0xbf   : > { %p618_p7 = pneg %p617_p4 }
  0xc1   : > { %854 = dma.done.wait (%p618_p7), %s436_s9, 128  }
  0xc2   : > { %856 = vsyncadd (%p618_p7), %s436_s9, 4294967168  ;;  %s26_s20 = sadd.s32 1, %s879_s20   ;;  %s1147_s11 = sld [smem:[#allocation15_spill]] }
  0xc3   : > { %p23_p10 = scmp.ge.s32.totalorder %s26_s20, 4   ;;  %s1148_s17 = sld [smem:[#allocation18_spill]] }
  0xc4   : > { %s1149_s18 = sld [smem:[#allocation16_spill]]  ;;  %s1151_s15 = smov %s863_s16 }
  0xc5   : > { %s1150_s19 = sld [smem:[#allocation17_spill]]  ;;  %25 = sbr.rel (!%p23_p10) target bundleno = 12 (0xc), region = 122 }
  0xc8   : > { %s1152_s16 = smov %s1147_s11 }
  0xca   :  { %441 = vsyncpa [#allocation3], 1 }
  0xcb   :  { %443 = vsyncpa [#allocation3 + $0x1], 1 }
  0xcc   :  { %444 = vsyncpa [#allocation6], 1 }
  0xcd   :  { %446 = vsyncpa [#allocation6 + $0x1], 1 }
  0xce   :  { %447 = vsyncpa [#allocation9], 1 }
  0xcf   :  { %449 = vsyncpa [#allocation9 + $0x1], 1 }
  0xd0   :  { %450 = vsyncpa [#allocation4], 1 }
  0xd1   :  { %452 = vsyncpa [#allocation4 + $0x1], 1 }

</bundles_post_ra>
